<compile_context>
chip_gen: v7x
topology: tpu7x:2x2x1
jax: 0.10.0
libtpu: 0.0.40
codegen_flags: <defaults>
</compile_context>

<pallas_src>
import math
import jax
import jax.numpy as jnp
from jax import lax
from jax.experimental import pallas as pl
from jax.experimental.pallas import tpu as pltpu

TM = 512  # row tile for flattened [M, C] matmul kernels (memory-bound -> big tiles)


# ----------------------------------------------------------------------------- helpers

def _round_width(width, multiplier, min_width=8, divisor=8):
    if not multiplier:
        return width
    width *= multiplier
    min_width = min_width or divisor
    out = max(min_width, int(width + divisor / 2) // divisor * divisor)
    if out < 0.9 * width:
        out += divisor
    return int(out)


def _round_repeats(repeats, multiplier):
    if not multiplier:
        return repeats
    return int(math.ceil(multiplier * repeats))


def _row_tile(m):
    """Pick a row tile: full-M single block when small, TM otherwise (with padding)."""
    if m <= TM:
        return m, m
    mp = ((m + TM - 1) // TM) * TM
    return TM, mp


# ----------------------------------------------------------------------------- Pallas kernels

def matmul_bn_act(x, w_bf16, shift, act):
    """y = act(x @ w + shift).  BN scale is pre-folded into w (bf16); x is f32 [M, K]."""
    M, K = x.shape
    Cout = w_bf16.shape[1]
    tm, Mp = _row_tile(M)
    xp = x if Mp == M else jnp.pad(x, ((0, Mp - M), (0, 0)))
    shift2 = shift.reshape(1, Cout).astype(jnp.float32)

    def kernel(x_ref, w_ref, sh_ref, o_ref):
        a = x_ref[...].astype(jnp.bfloat16)                     # MXU native dtype
        acc = jnp.dot(a, w_ref[...], preferred_element_type=jnp.float32)
        y = acc + sh_ref[...]
        if act == 'relu':
            y = jnp.maximum(y, 0.0)
        elif act == 'sigmoid':
            y = jax.nn.sigmoid(y)
        o_ref[...] = y

    out = pl.pallas_call(
        kernel,
        out_shape=jax.ShapeDtypeStruct((Mp, Cout), jnp.float32),
        grid=(Mp // tm,),
        in_specs=[pl.BlockSpec((tm, K), lambda i: (i, 0)),
                  pl.BlockSpec((K, Cout), lambda i: (0, 0)),
                  pl.BlockSpec((1, Cout), lambda i: (0, 0))],
        out_specs=pl.BlockSpec((tm, Cout), lambda i: (i, 0)),
        compiler_params=pltpu.CompilerParams(dimension_semantics=("parallel",)),
    )(xp, w_bf16, shift2)
    return out if Mp == M else out[:M]


def conv3_fused(x, gate, w_bf16, shift, identity, use_swish):
    """Fused tail of a BlockX3D block:
         y = relu( swish(gate * x) @ w + shift + identity )
    x: (N, R, Cp) f32, gate: (N, 1, Cp) f32 or None, identity: (N, R, Cout) f32.
    SE gating, swish, the 1x1x1 conv (+folded BN), the residual add and the block ReLU all
    happen in one pass -> no extra HBM round trips for the element-wise steps."""
    N, R, Cp = x.shape
    Cout = w_bf16.shape[1]
    rt, Rp = _row_tile(R)
    if Rp != R:
        x = jnp.pad(x, ((0, 0), (0, Rp - R), (0, 0)))
        identity = jnp.pad(identity, ((0, 0), (0, Rp - R), (0, 0)))
    shift2 = shift.reshape(1, Cout).astype(jnp.float32)
    has_gate = gate is not None

    def kernel(*refs):
        if has_gate:
            x_ref, g_ref, w_ref, sh_ref, id_ref, o_ref = refs
        else:
            x_ref, w_ref, sh_ref, id_ref, o_ref = refs
        xv = x_ref[...]                                          # (rt, Cp) f32
        if has_gate:
            xv = xv * g_ref[...]                                 # (1, Cp) per-batch gate
        if use_swish:
            xv = xv * jax.nn.sigmoid(xv)
        acc = jnp.dot(xv.astype(jnp.bfloat16), w_ref[...],
                      preferred_element_type=jnp.float32)
        o_ref[...] = jnp.maximum(acc + sh_ref[...] + id_ref[...], 0.0)

    in_specs = [pl.BlockSpec((None, rt, Cp), lambda n, r: (n, r, 0))]
    ops = [x]
    if has_gate:
        in_specs.append(pl.BlockSpec((None, 1, Cp), lambda n, r: (n, 0, 0)))
        ops.append(gate)
    in_specs += [pl.BlockSpec((Cp, Cout), lambda n, r: (0, 0)),
                 pl.BlockSpec((1, Cout), lambda n, r: (0, 0)),
                 pl.BlockSpec((None, rt, Cout), lambda n, r: (n, r, 0))]
    ops += [w_bf16, shift2, identity]

    out = pl.pallas_call(
        kernel,
        out_shape=jax.ShapeDtypeStruct((N, Rp, Cout), jnp.float32),
        grid=(N, Rp // rt),
        in_specs=in_specs,
        out_specs=pl.BlockSpec((None, rt, Cout), lambda n, r: (n, r, 0)),
        compiler_params=pltpu.CompilerParams(
            dimension_semantics=("parallel", "parallel")),
    )(*ops)
    return out if Rp == R else out[:, :R]


def depthwise_conv3d(x, taps, shift, *, stride=1, padding=(1, 1, 1), act='none',
                     want_pool=False):
    """Depthwise 3-D conv (stride (1, s, s)) + folded BN + optional ReLU.

    x: (N, T, H, W, C) f32; taps: (Kt, Kh, Kw, C) f32 (BN scale folded); shift: (C,).
    The grid is (batch, output-T tiles); each step manually DMAs a (TT + Kt - 1)-deep
    temporal halo window into a small VMEM scratch (so the kernel scales to real X3D
    inputs and v7x's 64 MiB VMEM).  The H stride is applied inside the kernel; the W axis
    is produced at stride 1 and decimated by the caller.
    When want_pool, the per-(n, c) sums of the (spatially strided) output are accumulated
    across T tiles as a second output (SE squeeze step, fused -> no extra pass)."""
    N, T, H, W, C = x.shape
    Kt, Kh, Kw, _ = taps.shape
    pt, ph, pw = padding
    s = stride
    To = T + 2 * pt - Kt + 1
    Ho = (H + 2 * ph - Kh) // s + 1            # strided output height
    Wo = W + 2 * pw - Kw + 1                   # stride-1 width (caller decimates if s > 1)
    # extra zero rows so the in-kernel strided H window (length s*Ho) stays in bounds
    extra_h = max(0, (Kh - 1) + s * Ho - (H + 2 * ph))
    xp = jnp.pad(x, ((0, 0), (pt, pt), (ph, ph + extra_h), (pw, pw), (0, 0)))
    Tp, Hp, Wp = xp.shape[1], xp.shape[2], xp.shape[3]

    TT = To if To <= 8 else next(c for c in (8, 4, 2, 1) if To % c == 0)
    TTin = TT + Kt - 1
    n_tt = To // TT
    shift2 = shift.reshape(1, C).astype(jnp.float32)

    def kernel(*refs):
        if want_pool:
            x_hbm, w_ref, sh_ref, o_ref, p_ref, buf, sem = refs
        else:
            x_hbm, w_ref, sh_ref, o_ref, buf, sem = refs
        n = pl.program_id(0)
        tb = pl.program_id(1)
        cp = pltpu.make_async_copy(
            x_hbm.at[n, pl.ds(tb * TT, TTin), :, :, :], buf, sem.at[0])
        cp.start()
        cp.wait()

        acc = jnp.zeros((TT, Ho, Wo, C), jnp.float32)
        for kt in range(Kt):
            for kh in range(Kh):
                for kw in range(Kw):
                    if s == 1:
                        win = buf[pl.ds(kt, TT), pl.ds(kh, Ho), pl.ds(kw, Wo), :]
                    else:
                        # load a contiguous H span and pick every s-th row via a free
                        # major-dim reshape (H stride applied inside the kernel).
                        span = buf[pl.ds(kt, TT), pl.ds(kh, s * Ho), pl.ds(kw, Wo), :]
                        win = span.reshape(TT, Ho, s, Wo, C)[:, :, 0]
                    tap = w_ref[kt, kh, pl.ds(kw, 1), :]          # (1, C)
                    acc = acc + win * tap
        y = acc + sh_ref[...]
        if act == 'relu':
            y = jnp.maximum(y, 0.0)
        o_ref[...] = y

        if want_pool:
            @pl.when(tb == 0)
            def _():
                p_ref[...] = jnp.zeros_like(p_ref)
            if s == 1:
                ysel = y
            else:
                wi = lax.broadcasted_iota(jnp.int32, y.shape, 2)
                ysel = jnp.where(wi % s == 0, y, 0.0)             # only kept W columns
            p_ref[...] += jnp.sum(ysel, axis=(0, 1, 2), keepdims=True).reshape(1, C)

    in_specs = [pl.BlockSpec(memory_space=pl.ANY),                # raw HBM, manual DMA
                pl.BlockSpec((Kt, Kh, Kw, C), lambda n, t: (0, 0, 0, 0)),
                pl.BlockSpec((1, C), lambda n, t: (0, 0))]
    out_spec_main = pl.BlockSpec((None, TT, Ho, Wo, C), lambda n, t: (n, t, 0, 0, 0))
    scratch = [pltpu.VMEM((TTin, Hp, Wp, C), jnp.float32),
               pltpu.SemaphoreType.DMA((1,))]

    if want_pool:
        out, pool = pl.pallas_call(
            kernel,
            out_shape=(jax.ShapeDtypeStruct((N, To, Ho, Wo, C), jnp.float32),
                       jax.ShapeDtypeStruct((N, 1, C), jnp.float32)),
            grid=(N, n_tt),
            in_specs=in_specs,
            out_specs=(out_spec_main,
                       pl.BlockSpec((None, 1, C), lambda n, t: (n, 0, 0))),
            scratch_shapes=scratch,
            compiler_params=pltpu.CompilerParams(
                dimension_semantics=("parallel", "arbitrary")),
        )(xp, taps, shift2)
        return out, pool.reshape(N, C)

    out = pl.pallas_call(
        kernel,
        out_shape=jax.ShapeDtypeStruct((N, To, Ho, Wo, C), jnp.float32),
        grid=(N, n_tt),
        in_specs=in_specs,
        out_specs=out_spec_main,
        scratch_shapes=scratch,
        compiler_params=pltpu.CompilerParams(
            dimension_semantics=("parallel", "parallel")),
    )(xp, taps, shift2)
    return out, None


def se_gate(pooled_sum, inv_cnt, w1, b1, w2, b2):
    """SE excitation MLP: gate = sigmoid(relu(mean @ w1 + b1) @ w2 + b2).
    pooled_sum: (N, Cp) channel sums from the fused pool; inv_cnt = 1 / (T*H*W)."""
    N, Cp = pooled_sum.shape
    B = w1.shape[1]
    b1r = b1.reshape(1, B).astype(jnp.float32)
    b2r = b2.reshape(1, Cp).astype(jnp.float32)

    def kernel(p_ref, w1_ref, b1_ref, w2_ref, b2_ref, o_ref):
        p = p_ref[...] * inv_cnt
        h = jnp.dot(p, w1_ref[...], preferred_element_type=jnp.float32) + b1_ref[...]
        h = jnp.maximum(h, 0.0)
        g = jnp.dot(h, w2_ref[...], preferred_element_type=jnp.float32) + b2_ref[...]
        o_ref[...] = jax.nn.sigmoid(g)

    return pl.pallas_call(
        kernel,
        out_shape=jax.ShapeDtypeStruct((N, Cp), jnp.float32),
        grid=(1,),
        in_specs=[pl.BlockSpec((N, Cp), lambda i: (0, 0)),
                  pl.BlockSpec((Cp, B), lambda i: (0, 0)),
                  pl.BlockSpec((1, B), lambda i: (0, 0)),
                  pl.BlockSpec((B, Cp), lambda i: (0, 0)),
                  pl.BlockSpec((1, Cp), lambda i: (0, 0))],
        out_specs=pl.BlockSpec((N, Cp), lambda i: (0, 0)),
    )(pooled_sum, w1, b1r, w2, b2r)


# ----------------------------------------------------------------------------- parameters

class ParamGen:
    def __init__(self, key):
        self.key = key

    def _next(self):
        self.key, sub = jax.random.split(self.key)
        return sub

    def normal(self, shape, std=0.05):
        return jax.random.normal(self._next(), shape, jnp.float32) * std

    def uniform(self, shape, lo, hi):
        return jax.random.uniform(self._next(), shape, jnp.float32, lo, hi)


def bn_fold(pg, c, eps=1e-5):
    gamma = pg.uniform((c,), 0.8, 1.2)
    beta = pg.normal((c,), 0.02)
    mean = pg.normal((c,), 0.02)
    var = pg.uniform((c,), 0.8, 1.2)
    scale = gamma / jnp.sqrt(var + eps)
    shift = beta - mean * scale
    return scale, shift


def _pw(pg, cin, cout, with_bn=True):
    """Pointwise conv weight (cin, cout): BN scale folded in, cast to bf16; shift kept f32."""
    w = pg.normal((cin, cout))
    if with_bn:
        scale, shift = bn_fold(pg, cout)
        w = w * scale[None, :]
    else:
        shift = jnp.zeros((cout,), jnp.float32)
    return w.astype(jnp.bfloat16), shift


def _dw(pg, kshape, c):
    """Depthwise taps (Kt, Kh, Kw, C): BN scale folded in (kept f32 for the VPU); shift f32."""
    w = pg.normal(tuple(kshape) + (c,))
    scale, shift = bn_fold(pg, c)
    return (w * scale).astype(jnp.float32), shift


def build_x3d_params(pg, in_channels=3, base_channels=24, num_stages=2,
                     stage_blocks=(1, 2, 5, 3), spatial_strides=(2, 2),
                     gamma_w=1.0, gamma_b=2.25, gamma_d=1.0,
                     se_style='half', se_ratio=1.0 / 16, use_swish=True):
    base_channels = _round_width(base_channels, gamma_w)
    stage_blocks = [_round_repeats(b, gamma_d) for b in stage_blocks][:num_stages]
    assert len(spatial_strides) == num_stages

    conv1_s_w = pg.normal((3, 3, in_channels, base_channels)).reshape(
        9 * in_channels, base_channels)
    conv1_t_w, conv1_t_shift = _dw(pg, (5, 1, 1), base_channels)
    stem = dict(conv1_s_w=conv1_s_w.astype(jnp.bfloat16),
                conv1_s_shift=jnp.zeros((base_channels,), jnp.float32),
                conv1_t_w=conv1_t_w, conv1_t_shift=conv1_t_shift)

    layer_inplanes = base_channels
    stages = []
    for i, nblocks in enumerate(stage_blocks):
        sstride = spatial_strides[i]
        inplanes = base_channels * 2 ** i
        planes = int(inplanes * gamma_b)
        if se_style == 'all':
            use_se = [True] * nblocks
        else:  # 'half'
            use_se = [j % 2 == 0 for j in range(nblocks)]
        blocks = []
        for j in range(nblocks):
            bin_ = layer_inplanes if j == 0 else inplanes
            bstride = sstride if j == 0 else 1
            need_ds = (j == 0) and (sstride != 1 or layer_inplanes != inplanes)
            has_se = use_se[j] and (se_ratio is not None)
            w1, sh1 = _pw(pg, bin_, planes)
            w2, sh2 = _dw(pg, (3, 3, 3), planes)
            w3, sh3 = _pw(pg, planes, inplanes)
            bp = dict(conv1_w=w1, conv1_shift=sh1,
                      conv2_w=w2, conv2_shift=sh2,
                      conv3_w=w3, conv3_shift=sh3)
            if need_ds:
                wd, shd = _pw(pg, bin_, inplanes)
                bp['ds_w'], bp['ds_shift'] = wd, shd
            if has_se:
                bneck = _round_width(planes, se_ratio)
                bp['se_fc1_w'] = pg.normal((planes, bneck))
                bp['se_fc1_b'] = pg.normal((bneck,))
                bp['se_fc2_w'] = pg.normal((bneck, planes))
                bp['se_fc2_b'] = pg.normal((planes,))
            blocks.append(dict(params=bp, stride=bstride, has_ds=need_ds,
                               has_se=has_se, use_swish=use_swish))
        stages.append(blocks)
        layer_inplanes = inplanes

    feat_dim = base_channels * 2 ** (len(stage_blocks) - 1)
    w5, sh5 = _pw(pg, feat_dim, int(feat_dim * gamma_b))
    head = dict(conv5_w=w5, conv5_shift=sh5)
    return dict(stem=stem, stages=stages, head=head)


# ----------------------------------------------------------------------------- forward

def stem_forward(x, stem_p):
    # conv1_s: (1,3,3) conv, stride (1,2,2), pad (0,1,1), no norm/act -> im2col + matmul.
    N, T, H, W, Cin = x.shape
    xpad = jnp.pad(x, ((0, 0), (0, 0), (1, 1), (1, 1), (0, 0)))
    Ho = (H + 2 - 3) // 2 + 1
    Wo = (W + 2 - 3) // 2 + 1
    cols = []
    for kh in range(3):
        for kw in range(3):
            cols.append(xpad[:, :, kh:kh + 2 * (Ho - 1) + 1:2,
                             kw:kw + 2 * (Wo - 1) + 1:2, :])
    patches = jnp.concatenate(cols, axis=-1)                      # (N, T, Ho, Wo, 9*Cin)
    Cout = stem_p['conv1_s_w'].shape[1]
    y = matmul_bn_act(patches.reshape(-1, 9 * Cin), stem_p['conv1_s_w'],
                      stem_p['conv1_s_shift'], 'none')
    y = y.reshape(N, T, Ho, Wo, Cout)
    # conv1_t: depthwise (5,1,1), pad (2,0,0), + BN + ReLU.
    y, _ = depthwise_conv3d(y, stem_p['conv1_t_w'], stem_p['conv1_t_shift'],
                            stride=1, padding=(2, 0, 0), act='relu', want_pool=False)
    return y


def block_forward(x, blk):
    p = blk['params']
    s = blk['stride']
    N, T, H, W, Cin = x.shape

    # conv1: 1x1x1 + folded BN + ReLU.
    Cp = p['conv1_w'].shape[1]
    out = matmul_bn_act(x.reshape(-1, Cin), p['conv1_w'], p['conv1_shift'], 'relu')
    out = out.reshape(N, T, H, W, Cp)

    # conv2: depthwise 3x3x3, stride (1, s, s), pad 1, + folded BN.  SE channel sums are
    # accumulated inside the same kernel when the block has an SE unit.
    out, pool = depthwise_conv3d(out, p['conv2_w'], p['conv2_shift'],
                                 stride=s, padding=(1, 1, 1), act='none',
                                 want_pool=blk['has_se'])
    if s != 1:
        # TODO(synk): the W-axis decimation is done host-side (H stride is in-kernel);
        # an in-kernel strided-sublane load would remove this last strided copy.
        out = out[:, :, :, ::s, :]
    _, To, Ho, Wo, _ = out.shape
    R = To * Ho * Wo

    # SE excitation gate from the fused channel sums (mean folded in via 1/R).
    gate = None
    if blk['has_se']:
        gate = se_gate(pool, 1.0 / float(R),
                       p['se_fc1_w'], p['se_fc1_b'], p['se_fc2_w'], p['se_fc2_b'])
        gate = gate.reshape(N, 1, Cp)

    # identity / downsample branch: 1x1x1 conv stride (1,s,s) + folded BN.
    if blk['has_ds']:
        ids = x[:, :, ::s, ::s, :] if s != 1 else x
        Cds = p['ds_w'].shape[1]
        identity = matmul_bn_act(ids.reshape(-1, Cin), p['ds_w'], p['ds_shift'], 'none')
        identity = identity.reshape(N, R, Cds)
    else:
        identity = x.reshape(N, R, Cin)

    # conv3 (1x1x1 + folded BN) with fused SE-gate, swish, residual add and block ReLU.
    out = conv3_fused(out.reshape(N, R, Cp), gate, p['conv3_w'], p['conv3_shift'],
                      identity, blk['use_swish'])
    Cout = p['conv3_w'].shape[1]
    return out.reshape(N, To, Ho, Wo, Cout)


def x3d_forward(x_ncthw, model):
    """x_ncthw: (N, C, T, H, W) like PyTorch; returns (N, C_feat, T, H', W')."""
    x = jnp.transpose(x_ncthw, (0, 2, 3, 4, 1)).astype(jnp.float32)   # -> NTHWC
    x = stem_forward(x, model['stem'])
    for blocks in model['stages']:
        for blk in blocks:
            x = block_forward(x, blk)
    h = model['head']
    N, T, H, W, C = x.shape
    y = matmul_bn_act(x.reshape(-1, C), h['conv5_w'], h['conv5_shift'], 'relu')
    y = y.reshape(N, T, H, W, -1)
    return jnp.transpose(y, (0, 4, 1, 2, 3))                          # -> NCDHW


# ----------------------------------------------------------------------------- main

if __name__ == "__main__":
    key = jax.random.PRNGKey(0)
    kx, kp = jax.random.split(key)

    # Small X3D configuration: 2 stages, stage_blocks -> (1, 2), base_channels 24,
    # spatial strides (2, 2), SE style 'half', swish on.
    x = jax.random.normal(kx, (1, 3, 4, 16, 16), jnp.float32)   # (N, C, T, H, W)
    pg = ParamGen(kp)
    model = build_x3d_params(pg,
                             in_channels=3, base_channels=24, num_stages=2,
                             stage_blocks=(1, 2, 5, 3), spatial_strides=(2, 2),
                             gamma_w=1.0, gamma_b=2.25, gamma_d=1.0,
                             se_style='half', se_ratio=1.0 / 16, use_swish=True)

    out = x3d_forward(x, model)
    out = jax.block_until_ready(out)

    # stem /2, stage1 /2, stage2 /2 -> 16/8 = 2 ; feat_dim = int(48 * 2.25) = 108
    assert out.shape == (1, 108, 4, 2, 2), out.shape
    assert out.dtype == jnp.float32
    # TODO(synk): training-mode BatchNorm (batch statistics) and checkpoint loading are not
    # reproduced; BN uses folded running statistics (inference semantics).
    print("KERNEL_OK")
</pallas_src>

<mosaic_0001>
module attributes {stable_mosaic.version = 11 : i64} {
  func.func @kernel(%arg0: i32, %arg1: memref<256x27xf32, #tpu.memory_space<vmem>>, %arg2: memref<27x24xbf16, #tpu.memory_space<vmem>>, %arg3: memref<1x24xf32, #tpu.memory_space<vmem>>, %arg4: memref<256x24xf32, #tpu.memory_space<vmem>>) attributes {dimension_semantics = [#tpu.dimension_semantics<parallel>], iteration_bounds = array<i64: 1>, scalar_prefetch = 0 : i64, scratch_operands = 0 : i64, tpu.core_type = #tpu.core_type<tc>, window_params = [{transform_indices = @transform_0, window_bounds = array<i64: 256, 27>}, {pipeline_mode = #tpu.pipeline_mode<synchronous>, transform_indices = @transform_1, window_bounds = array<i64: 27, 24>}, {pipeline_mode = #tpu.pipeline_mode<synchronous>, transform_indices = @transform_2, window_bounds = array<i64: 1, 24>}, {transform_indices = @transform_3, window_bounds = array<i64: 256, 24>}]} {
    %c0 = arith.constant 0 : index
    %c0_0 = arith.constant 0 : index
    %0 = vector.load %arg1[%c0, %c0_0] : memref<256x27xf32, #tpu.memory_space<vmem>>, vector<256x27xf32>
    %1 = arith.truncf %0 : vector<256x27xf32> to vector<256x27xbf16>
    %c0_1 = arith.constant 0 : index
    %c0_2 = arith.constant 0 : index
    %2 = vector.load %arg2[%c0_1, %c0_2] : memref<27x24xbf16, #tpu.memory_space<vmem>>, vector<27x24xbf16>
    %cst = arith.constant dense<0.000000e+00> : vector<256x24xf32>
    %3 = tpu.matmul %1, %2, %cst {dimension_numbers = #tpu.dot_dimension_numbers<[1], [0], [0], [1], [0, 0, 1, 1], [], []>} : vector<256x27xbf16>, vector<27x24xbf16>, vector<256x24xf32> -> vector<256x24xf32>
    %c0_3 = arith.constant 0 : index
    %c0_4 = arith.constant 0 : index
    %4 = vector.load %arg3[%c0_3, %c0_4] : memref<1x24xf32, #tpu.memory_space<vmem>>, vector<1x24xf32>
    %5 = vector.broadcast %4 : vector<1x24xf32> to vector<256x24xf32>
    %6 = arith.addf %3, %5 : vector<256x24xf32>
    %c0_5 = arith.constant 0 : index
    %c0_6 = arith.constant 0 : index
    %7 = vector.load %arg4[%c0_5, %c0_6] : memref<256x24xf32, #tpu.memory_space<vmem>>, vector<256x24xf32>
    tpu.vector_store %arg4[%c0_5, %c0_6], %6 {strides = array<i32>} : memref<256x24xf32, #tpu.memory_space<vmem>>, vector<256x24xf32>,
    return
  }
  func.func @transform_0(%arg0: i32) -> (i32, i32) {
    %c0_i32 = arith.constant 0 : i32
    %c0_i32_0 = arith.constant 0 : i32
    return %arg0, %c0_i32 : i32, i32
  }
  func.func @transform_1(%arg0: i32) -> (i32, i32) {
    %c0_i32 = arith.constant 0 : i32
    %c0_i32_0 = arith.constant 0 : i32
    %c0_i32_1 = arith.constant 0 : i32
    return %c0_i32, %c0_i32_0 : i32, i32
  }
  func.func @transform_2(%arg0: i32) -> (i32, i32) {
    %c0_i32 = arith.constant 0 : i32
    %c0_i32_0 = arith.constant 0 : i32
    %c0_i32_1 = arith.constant 0 : i32
    return %c0_i32, %c0_i32_0 : i32, i32
  }
  func.func @transform_3(%arg0: i32) -> (i32, i32) {
    %c0_i32 = arith.constant 0 : i32
    %c0_i32_0 = arith.constant 0 : i32
    return %arg0, %c0_i32 : i32, i32
  }
}

</mosaic_0001>

<bundles_post_ra>
// kernel: tpu_custom_call.1
= control target key start
LH: loop header
LB: loop body
LE: loop exit
PB: predicated region body
PF: predicated region fallthrough
CT: control target
= control target key end

     0   :  { %vm134_vm0 = vcmask 1044480   ;;  %vm135_vm1 = vcmask 1045504   ;;  %v419_v1 = vmov 65535   ;;  %vm85_vm2 = vcmask 220160   ;;  %s723_s1 = inlined_call_operand.vmem [shape: bf16[27,24], index: 1, kind: input, shape index: {}]   ;;  %s724_s0 = inlined_call_operand.vmem [shape: f32[256,27], index: 0, kind: input, shape index: {}]   ;;  %s725_s2 = inlined_call_operand.vmem [shape: f32[1,24], index: 2, kind: input, shape index: {}]   ;;  %s726_s3 = inlined_call_operand.vmem [shape: f32[256,24], index: 3, kind: output, shape index: {}]  }
   0x1   :  { %v417_v0 = vld [vmem:[%s723_s1] sm:$0xff]   ;;  %v136_v2 = vsel %vm134_vm0, 4294967295, %v419_v1  ;;  %v418_v3 = vld [vmem:[%s723_s1 + $0x8] sm:$0x3f]   ;;  %v17_v11 = vld [vmem:[%s724_s0 + $0x10] sm:$0xff]  ;;  %vm302_vm3 = vcmask 195584  }
   0x2   :  { %376 = vmatprep.subr.bf16.mxu0 %v417_v0  ;;  %412 = vmatprep.subr.bf16.mxu1 %v417_v0  ;;  %v137_v4 = vsel %vm135_vm1, %v136_v2, 0  ;;  %v15_v5 = vld [vmem:[%s724_s0] sm:$0xff]  ;;  %v16_v6 = vld [vmem:[%s724_s0 + $0x8] sm:$0xff]  ;;  %v18_v12 = vld [vmem:[%s724_s0 + $0x18] sm:$0xff] }
   0x3   :  { %v31_v7 = vld [vmem:[%s724_s0 + $0x80] sm:$0xff]  ;;  %377 = vmatpush3.bf16.msra.mxu0 %v417_v0  ;;  %414 = vmatpush3.bf16.msra.mxu1 %v417_v0  ;;  %v139_v8 = vand.u32 %v418_v3, %v137_v4  ;;  %v47_v9 = vpack.c.bf16 %v16_v6, %v15_v5  ;;  %v32_v10 = vld [vmem:[%s724_s0 + $0x88] sm:$0xff]  ;;  %v33_v14 = vld [vmem:[%s724_s0 + $0x90] sm:$0xff]  ;;  %v48_v20 = vpack.c.bf16 %v18_v12, %v17_v11 }
   0x4   :  { %v55_v13 = vpack.c.bf16 %v32_v10, %v31_v7  ;;  %v34_v15 = vld [vmem:[%s724_s0 + $0x98] sm:$0xff]  ;;  %v19_v16 = vld [vmem:[%s724_s0 + $0x20] sm:$0xff]  ;;  %v20_v17 = vld [vmem:[%s724_s0 + $0x28] sm:$0xff] }
   0x5   :  { %378 = vmatprep.subr.bf16.mxu0 %v139_v8  ;;  %413 = vmatprep.subr.bf16.mxu1 %v139_v8  ;;  %v35_v18 = vld [vmem:[%s724_s0 + $0xa0] sm:$0xff]  ;;  %v36_v19 = vld [vmem:[%s724_s0 + $0xa8] sm:$0xff]  ;;  %v56_v21 = vpack.c.bf16 %v34_v15, %v33_v14  ;;  %v49_v22 = vpack.c.bf16 %v20_v17, %v19_v16  ;;  %v21_v24 = vld [vmem:[%s724_s0 + $0x30] sm:$0xff] }
   0x6   :  { %380 = vmatprep.mubr.msk.bf16.mxu0 %vm85_vm2, %v47_v9  ;;  %396 = vmatprep.mubr.msk.bf16.mxu1 %vm85_vm2, %v55_v13  ;;  %v57_v23 = vpack.c.bf16 %v36_v19, %v35_v18  ;;  %v22_v25 = vld [vmem:[%s724_s0 + $0x38] sm:$0xff]  ;;  %v37_v26 = vld [vmem:[%s724_s0 + $0xb0] sm:$0xff]  ;;  %v23_v28 = vld [vmem:[%s724_s0 + $0x40] sm:$0xff] }
   0x7   :  { %379 = vmatpush3.bf16.msra.mxu0 %v139_v8  ;;  %415 = vmatpush3.bf16.msra.mxu1 %v139_v8  ;;  %v38_v27 = vld [vmem:[%s724_s0 + $0xb8] sm:$0xff]  ;;  %v24_v29 = vld [vmem:[%s724_s0 + $0x48] sm:$0xff]  ;;  %v39_v30 = vld [vmem:[%s724_s0 + $0xc0] sm:$0xff]  ;;  %v50_v32 = vpack.c.bf16 %v22_v25, %v21_v24 }
   0x8   :  { %v40_v31 = vld [vmem:[%s724_s0 + $0xc8] sm:$0xff]  ;;  %v58_v33 = vpack.c.bf16 %v38_v27, %v37_v26  ;;  %v51_v34 = vpack.c.bf16 %v24_v29, %v23_v28  ;;  %v25_v36 = vld [vmem:[%s724_s0 + $0x50] sm:$0xff]  ;;  %v26_v37 = vld [vmem:[%s724_s0 + $0x58] sm:$0xff] }
   0x9   :  { %v59_v35 = vpack.c.bf16 %v40_v31, %v39_v30  ;;  %v41_v38 = vld [vmem:[%s724_s0 + $0xd0] sm:$0xff]  ;;  %v42_v39 = vld [vmem:[%s724_s0 + $0xd8] sm:$0xff]  ;;  %v27_v40 = vld [vmem:[%s724_s0 + $0x60] sm:$0xff]  ;;  %v52_v44 = vpack.c.bf16 %v26_v37, %v25_v36 }
   0xa   :  { %381 = vmatmul.mubr.msk.bf16.vlgmr.msra.gmra.mrb[0].mxu0 %vm85_vm2, %v48_v20  ;;  %397 = vmatmul.mubr.msk.bf16.vlgmr.msra.gmra.mrb[0].mxu1 %vm85_vm2, %v56_v21  ;;  %v28_v41 = vld [vmem:[%s724_s0 + $0x68] sm:$0xff]  ;;  %v43_v42 = vld [vmem:[%s724_s0 + $0xe0] sm:$0xff]  ;;  %v60_v45 = vpack.c.bf16 %v42_v39, %v41_v38  ;;  %v29_v48 = vld [vmem:[%s724_s0 + $0x70] sm:$0xff] }
   0xb   :  { %384 = vmatprep.mubr.msk.bf16.mxu0 %vm85_vm2, %v49_v22  ;;  %400 = vmatprep.mubr.msk.bf16.mxu1 %vm85_vm2, %v57_v23  ;;  %v44_v43 = vld [vmem:[%s724_s0 + $0xe8] sm:$0xff]  ;;  %v53_v46 = vpack.c.bf16 %v28_v41, %v27_v40  ;;  %v30_v49 = vld [vmem:[%s724_s0 + $0x78] sm:$0xff]  ;;  %v45_v50 = vld [vmem:[%s724_s0 + $0xf0] sm:$0xff] }
   0xc   :  { %v61_v47 = vpack.c.bf16 %v44_v43, %v43_v42  ;;  %v46_v51 = vld [vmem:[%s724_s0 + $0xf8] sm:$0xff]  ;;  %v54_v52 = vpack.c.bf16 %v30_v49, %v29_v48  ;;  %v561_v54 = vld [vmem:[%s725_s2] ss:$0 sm:$0xff] }
   0xd   :  { %v62_v53 = vpack.c.bf16 %v46_v51, %v45_v50 }
  0x12   :  { %385 = vmatmul.mubr.msk.bf16.gmra.mrb[4].mxu0 %vm85_vm2, %v50_v32  ;;  %401 = vmatmul.mubr.msk.bf16.gmra.mrb[4].mxu1 %vm85_vm2, %v58_v33 }
  0x13   :  { %388 = vmatprep.mubr.msk.bf16.mxu0 %vm85_vm2, %v51_v34  ;;  %404 = vmatprep.mubr.msk.bf16.mxu1 %vm85_vm2, %v59_v35 }
  0x1a   :  { %389 = vmatmul.mubr.msk.bf16.gmra.mrb[8].mxu0 %vm85_vm2, %v52_v44  ;;  %405 = vmatmul.mubr.msk.bf16.gmra.mrb[8].mxu1 %vm85_vm2, %v60_v45 }
  0x1b   :  { %392 = vmatprep.mubr.msk.bf16.mxu0 %vm85_vm2, %v53_v46  ;;  %408 = vmatprep.mubr.msk.bf16.mxu1 %vm85_vm2, %v61_v47 }
  0x22   :  { %393 = vmatmul.mubr.msk.bf16.gmra.mrb[12].mxu0 %vm85_vm2, %v54_v52  ;;  %409 = vmatmul.mubr.msk.bf16.gmra.mrb[12].mxu1 %vm85_vm2, %v62_v53 }
  0xdd   :  { %v382_v55 = vpop.f32.mrb[0].mxu0  ;;  %v398_v56 = vpop.f32.mrb[0].mxu1 }
  0xde   :  { %v184_v57 = vadd.f32 %v382_v55, %v561_v54  ;;  %v248_v58 = vadd.f32 %v398_v56, %v561_v54  ;;  %v175_v59 = vpop.f32.mrb[1].mxu0  ;;  %v239_v60 = vpop.f32.mrb[1].mxu1 }
  0xdf   :  { %v176_v61 = vadd.f32 %v561_v54, %v175_v59  ;;  %v240_v62 = vadd.f32 %v561_v54, %v239_v60  ;;  %v383_v63 = vpop.f32.mrb[2].mxu0  ;;  %v399_v0 = vpop.f32.mrb[2].mxu1 }
  0xe0   :  { %305 = vst.msk [vmem:[%s726_s3 + $0x10] sm:$0xff] %vm302_vm3, %v184_v57  ;;  %321 = vst.msk [vmem:[%s726_s3 + $0x90] sm:$0xff] %vm302_vm3, %v248_v58  ;;  %v187_v1 = vadd.f32 %v383_v63, %v561_v54  ;;  %v251_v2 = vadd.f32 %v399_v0, %v561_v54  ;;  %v178_v3 = vpop.f32.mrb[3].mxu0  ;;  %v242_v4 = vpop.f32.mrb[3].mxu1 }
  0xe1   :  { %303 = vst.msk [vmem:[%s726_s3] sm:$0xff] %vm302_vm3, %v176_v61  ;;  %319 = vst.msk [vmem:[%s726_s3 + $0x80] sm:$0xff] %vm302_vm3, %v240_v62  ;;  %v179_v5 = vadd.f32 %v561_v54, %v178_v3  ;;  %v243_v6 = vadd.f32 %v561_v54, %v242_v4 }
  0xe2   :  { %306 = vst.msk [vmem:[%s726_s3 + $0x18] sm:$0xff] %vm302_vm3, %v187_v1  ;;  %322 = vst.msk [vmem:[%s726_s3 + $0x98] sm:$0xff] %vm302_vm3, %v251_v2 }
  0xe3   :  { %304 = vst.msk [vmem:[%s726_s3 + $0x8] sm:$0xff] %vm302_vm3, %v179_v5  ;;  %320 = vst.msk [vmem:[%s726_s3 + $0x88] sm:$0xff] %vm302_vm3, %v243_v6 }
  0xe5   :  { %v386_v7 = vpop.f32.mrb[4].mxu0  ;;  %v402_v8 = vpop.f32.mrb[4].mxu1 }
  0xe6   :  { %v200_v9 = vadd.f32 %v386_v7, %v561_v54  ;;  %v264_v10 = vadd.f32 %v402_v8, %v561_v54  ;;  %v191_v11 = vpop.f32.mrb[5].mxu0  ;;  %v255_v12 = vpop.f32.mrb[5].mxu1 }
  0xe7   :  { %v192_v13 = vadd.f32 %v561_v54, %v191_v11  ;;  %v256_v14 = vadd.f32 %v561_v54, %v255_v12  ;;  %v387_v15 = vpop.f32.mrb[6].mxu0  ;;  %v403_v16 = vpop.f32.mrb[6].mxu1 }
  0xe8   :  { %309 = vst.msk [vmem:[%s726_s3 + $0x30] sm:$0xff] %vm302_vm3, %v200_v9  ;;  %325 = vst.msk [vmem:[%s726_s3 + $0xb0] sm:$0xff] %vm302_vm3, %v264_v10  ;;  %v203_v17 = vadd.f32 %v387_v15, %v561_v54  ;;  %v267_v18 = vadd.f32 %v403_v16, %v561_v54  ;;  %v194_v19 = vpop.f32.mrb[7].mxu0  ;;  %v258_v20 = vpop.f32.mrb[7].mxu1 }
  0xe9   :  { %307 = vst.msk [vmem:[%s726_s3 + $0x20] sm:$0xff] %vm302_vm3, %v192_v13  ;;  %323 = vst.msk [vmem:[%s726_s3 + $0xa0] sm:$0xff] %vm302_vm3, %v256_v14  ;;  %v195_v21 = vadd.f32 %v561_v54, %v194_v19  ;;  %v259_v22 = vadd.f32 %v561_v54, %v258_v20 }
  0xea   :  { %310 = vst.msk [vmem:[%s726_s3 + $0x38] sm:$0xff] %vm302_vm3, %v203_v17  ;;  %326 = vst.msk [vmem:[%s726_s3 + $0xb8] sm:$0xff] %vm302_vm3, %v267_v18 }
  0xeb   :  { %308 = vst.msk [vmem:[%s726_s3 + $0x28] sm:$0xff] %vm302_vm3, %v195_v21  ;;  %324 = vst.msk [vmem:[%s726_s3 + $0xa8] sm:$0xff] %vm302_vm3, %v259_v22 }
  0xed   :  { %v390_v23 = vpop.f32.mrb[8].mxu0  ;;  %v406_v24 = vpop.f32.mrb[8].mxu1 }
  0xee   :  { %v216_v25 = vadd.f32 %v390_v23, %v561_v54  ;;  %v280_v26 = vadd.f32 %v406_v24, %v561_v54  ;;  %v207_v27 = vpop.f32.mrb[9].mxu0  ;;  %v271_v28 = vpop.f32.mrb[9].mxu1 }
  0xef   :  { %v208_v29 = vadd.f32 %v561_v54, %v207_v27  ;;  %v272_v30 = vadd.f32 %v561_v54, %v271_v28  ;;  %v391_v31 = vpop.f32.mrb[10].mxu0  ;;  %v407_v32 = vpop.f32.mrb[10].mxu1 }
  0xf0   :  { %313 = vst.msk [vmem:[%s726_s3 + $0x50] sm:$0xff] %vm302_vm3, %v216_v25  ;;  %329 = vst.msk [vmem:[%s726_s3 + $0xd0] sm:$0xff] %vm302_vm3, %v280_v26  ;;  %v219_v33 = vadd.f32 %v391_v31, %v561_v54  ;;  %v283_v34 = vadd.f32 %v407_v32, %v561_v54  ;;  %v210_v35 = vpop.f32.mrb[11].mxu0  ;;  %v274_v36 = vpop.f32.mrb[11].mxu1 }
  0xf1   :  { %311 = vst.msk [vmem:[%s726_s3 + $0x40] sm:$0xff] %vm302_vm3, %v208_v29  ;;  %327 = vst.msk [vmem:[%s726_s3 + $0xc0] sm:$0xff] %vm302_vm3, %v272_v30  ;;  %v211_v37 = vadd.f32 %v561_v54, %v210_v35  ;;  %v275_v38 = vadd.f32 %v561_v54, %v274_v36 }
  0xf2   :  { %314 = vst.msk [vmem:[%s726_s3 + $0x58] sm:$0xff] %vm302_vm3, %v219_v33  ;;  %330 = vst.msk [vmem:[%s726_s3 + $0xd8] sm:$0xff] %vm302_vm3, %v283_v34 }
  0xf3   :  { %312 = vst.msk [vmem:[%s726_s3 + $0x48] sm:$0xff] %vm302_vm3, %v211_v37  ;;  %328 = vst.msk [vmem:[%s726_s3 + $0xc8] sm:$0xff] %vm302_vm3, %v275_v38 }
  0xf5   :  { %v394_v39 = vpop.f32.mrb[12].mxu0  ;;  %v410_v40 = vpop.f32.mrb[12].mxu1 }
  0xf6   :  { %v232_v41 = vadd.f32 %v394_v39, %v561_v54  ;;  %v296_v42 = vadd.f32 %v410_v40, %v561_v54  ;;  %v223_v43 = vpop.f32.mrb[13].mxu0  ;;  %v287_v44 = vpop.f32.mrb[13].mxu1 }
  0xf7   :  { %v224_v45 = vadd.f32 %v561_v54, %v223_v43  ;;  %v288_v46 = vadd.f32 %v561_v54, %v287_v44  ;;  %v395_v47 = vpop.f32.mrb[14].mxu0  ;;  %v411_v48 = vpop.f32.mrb[14].mxu1 }
  0xf8   :  { %317 = vst.msk [vmem:[%s726_s3 + $0x70] sm:$0xff] %vm302_vm3, %v232_v41  ;;  %333 = vst.msk [vmem:[%s726_s3 + $0xf0] sm:$0xff] %vm302_vm3, %v296_v42  ;;  %v235_v49 = vadd.f32 %v395_v47, %v561_v54  ;;  %v299_v50 = vadd.f32 %v411_v48, %v561_v54  ;;  %v226_v51 = vpop.f32.mrb[15].mxu0  ;;  %v290_v52 = vpop.f32.mrb[15].mxu1 }
  0xf9   :  { %315 = vst.msk [vmem:[%s726_s3 + $0x60] sm:$0xff] %vm302_vm3, %v224_v45  ;;  %331 = vst.msk [vmem:[%s726_s3 + $0xe0] sm:$0xff] %vm302_vm3, %v288_v46  ;;  %v227_v53 = vadd.f32 %v561_v54, %v226_v51  ;;  %v291_v55 = vadd.f32 %v561_v54, %v290_v52 }
  0xfa   :  { %318 = vst.msk [vmem:[%s726_s3 + $0x78] sm:$0xff] %vm302_vm3, %v235_v49  ;;  %334 = vst.msk [vmem:[%s726_s3 + $0xf8] sm:$0xff] %vm302_vm3, %v299_v50 }
  0xfb   :  { %316 = vst.msk [vmem:[%s726_s3 + $0x68] sm:$0xff] %vm302_vm3, %v227_v53  ;;  %332 = vst.msk [vmem:[%s726_s3 + $0xe8] sm:$0xff] %vm302_vm3, %v291_v55 }

</bundles_post_ra>
